<compile_context>
chip_gen: v5e
topology: v5e:2x2
jax: 0.10.0
libtpu: 0.0.40
codegen_flags: <defaults>
</compile_context>

<pallas_src>
import functools
import math

import jax
import jax.numpy as jnp
from jax import lax
from jax.experimental import pallas as pl
from jax.experimental.pallas import tpu as pltpu

EPSILON = 1e-6

_LANES = 128


def _round_up(x, m):
    return (x + m - 1) // m * m


def _cdiv(a, b):
    return (a + b - 1) // b


def _vmem_capacity_bytes():
    try:
        cap = getattr(pltpu.get_tpu_info(), "vmem_capacity_bytes", None)
        if cap:
            return int(cap)
    except Exception:
        pass
    return 64 * 1024 * 1024  # conservative (v7x-sized) fallback


def _dice_partials_kernel(x_ref, t_ref, inter_ref, usum_ref, *,
                          nc_total, cps, steps_per_split, group, exact, unroll):
    """Accumulate lane-shaped partial dice sums over the spatial axis.

    x_ref, t_ref : (TR, cps, 128) blocks (native dtype, cast to f32 here)
    inter_ref    : (TR, 128) f32  -- sum_n x*t folded onto 128 lanes
    usum_ref     : (TR, 128) f32  -- sum_n x + sum_n t folded onto 128 lanes
    """
    s = pl.program_id(0)          # spatial split (core-parallel) axis
    k = pl.program_id(2)          # reduction axis (last)

    @pl.when(k == 0)
    def _init():
        inter_ref[...] = jnp.zeros_like(inter_ref)
        usum_ref[...] = jnp.zeros_like(usum_ref)

    tr = x_ref.shape[0]
    ngroups = cps // group
    # Intended (unclamped) first chunk column-block of this grid step.
    blk_chunk0 = (s * steps_per_split + k) * cps

    def accumulate(masked):
        if masked:
            sub_ids = lax.broadcasted_iota(jnp.int32, (tr, group, _LANES), 1)

        def body(g, carry):
            i3, u3 = carry
            c0 = pl.multiple_of(g * group, group)
            xg = x_ref[:, pl.ds(c0, group), :].astype(jnp.float32)
            tg = t_ref[:, pl.ds(c0, group), :].astype(jnp.float32)
            if masked:
                rem = nc_total - (blk_chunk0 + c0)   # valid chunks from here on
                valid = sub_ids < rem
                xg = jnp.where(valid, xg, 0.0)
                tg = jnp.where(valid, tg, 0.0)
            return i3 + xg * tg, u3 + xg + tg

        z = jnp.zeros((tr, group, _LANES), jnp.float32)
        i3, u3 = lax.fori_loop(0, ngroups, body, (z, z), unroll=unroll)
        # One cheap cross-sublane reduce per grid step.
        inter_ref[...] += i3.sum(axis=1)
        usum_ref[...] += u3.sum(axis=1)

    if exact:
        accumulate(masked=False)
    else:
        in_bounds = (blk_chunk0 + cps) <= nc_total

        @pl.when(in_bounds)
        def _full():
            accumulate(masked=False)

        @pl.when(jnp.logical_not(in_bounds))
        def _tail():
            accumulate(masked=True)


def _reference_loss(inp, tgt, weight):
    B, C = inp.shape[:2]
    x = inp.reshape(B, C, -1).astype(jnp.float32)
    t = tgt.reshape(B, C, -1).astype(jnp.float32)
    inter = jnp.sum(x * t, axis=2)
    union = jnp.sum(x, axis=2) + jnp.sum(t, axis=2) + EPSILON
    if weight is None:
        dice = 2.0 * inter / union
    else:
        dice = 2.0 * inter * jnp.asarray(weight, jnp.float32)[None, :] / union
    return jnp.mean(-1.0 * jnp.mean(dice, axis=1))


def multiclass_dice_loss(inp, target_one_hot, weight_score=None, *,
                         max_tile_n=131072,
                         min_pallas_bytes=1 << 20,
                         predictions_in_bfloat16=False,
                         unroll=2):
    """inp, target_one_hot: (B, C, *spatial). Returns scalar float32 loss.

    Matches torch MultiClassDice.forward:
      inter = sum_n(x*t); union = sum_n(x)+sum_n(t)+EPS
      loss  = mean_b(-mean_c(2*inter*w / union))   (w broadcast over batch)
    """
    B, C = inp.shape[:2]
    N = math.prod(inp.shape[2:])
    R = B * C

    # Tiny inputs: launch/pipeline overhead dominates; use fused XLA reduction.
    total_bytes = (inp.size * inp.dtype.itemsize
                   + target_one_hot.size * target_one_hot.dtype.itemsize)
    if total_bytes < min_pallas_bytes:
        return _reference_loss(inp, target_one_hot, weight_score)

    x = inp.reshape(R, N)
    t = target_one_hot.reshape(R, N)
    if predictions_in_bfloat16:
        # Accuracy tradeoff: halves the prediction stream's HBM bytes.
        x = x.astype(jnp.bfloat16)

    # Pad spatial only up to the next 128 multiple (<=127 zero cols, exact for
    # sums); the big tile-granularity pad of the previous version is gone.
    N128 = _round_up(N, _LANES)
    if N128 != N:
        x = jnp.pad(x, ((0, 0), (0, N128 - N)))
        t = jnp.pad(t, ((0, 0), (0, N128 - N)))
    NC = N128 // _LANES                    # number of 128-lane chunks per row
    x = x.reshape(R, NC, _LANES)
    t = t.reshape(R, NC, _LANES)

    # Rows: TR=8 (or full extent if fewer). No row padding; a partial last row
    # block reads/writes only valid rows (garbage rows never reach the output).
    TR = 8 if R >= 8 else R
    row_blocks = _cdiv(R, TR)

    # Spatial chunks per grid step, sized from per-generation VMEM capacity
    # (double-buffered inputs capped at ~cap/4) and bounded by max_tile_n.
    vmem_cap = _vmem_capacity_bytes()
    per_step_bytes = vmem_cap // 8         # per-buffer step budget (both inputs)
    bytes_per_chunk = TR * _LANES * (x.dtype.itemsize + t.dtype.itemsize)

    if NC <= 8:
        cps = NC                           # single group, full extent (legal block)
    else:
        budget_chunks = max(8, per_step_bytes // bytes_per_chunk)
        cap_chunks = max(1024, max_tile_n) // _LANES
        cps = min(budget_chunks, cap_chunks, NC)
        cps = max(8, cps // 8 * 8)         # multiple of 8 -> whole (8,128) tiles

        # Aim for an even number of spatial blocks so the size-2 split axis
        # never duplicates work (and v7x can shard it across both cores).
        blocks = _cdiv(NC, cps)
        if blocks == 1 and NC >= 16:
            cps = max(8, _round_up(_cdiv(NC, 2), 8))
            blocks = _cdiv(NC, cps)
        if blocks > 1 and blocks % 2 == 1:
            cps_alt = max(8, _round_up(_cdiv(NC, blocks + 1), 8))
            if _cdiv(NC, cps_alt) % 2 == 0:
                cps = cps_alt

    group = 8 if cps >= 8 else cps
    spatial_blocks = _cdiv(NC, cps)
    S = 2 if (spatial_blocks >= 2 and spatial_blocks % 2 == 0) else 1
    K = _cdiv(spatial_blocks, S)
    exact = (NC % cps == 0) and (S * K == spatial_blocks)

    grid = (S, row_blocks, K)
    last_blk = spatial_blocks - 1

    def in_map(s, r, k):
        # Clamp so the DMA never targets a nonexistent block; the kernel masks
        # by the *intended* chunk index, so clamped duplicates contribute zero.
        return (r, jnp.minimum(s * K + k, last_blk), 0)

    def out_map(s, r, k):
        return (s, r, 0)

    kernel = functools.partial(
        _dice_partials_kernel,
        nc_total=NC, cps=cps, steps_per_split=K, group=group, exact=exact,
        unroll=max(1, min(unroll, cps // group)))

    inter_l, usum_l = pl.pallas_call(
        kernel,
        out_shape=(
            jax.ShapeDtypeStruct((S, R, _LANES), jnp.float32),
            jax.ShapeDtypeStruct((S, R, _LANES), jnp.float32),
        ),
        grid_spec=pltpu.PrefetchScalarGridSpec(
            num_scalar_prefetch=0,
            grid=grid,
            in_specs=[
                pl.BlockSpec((TR, cps, _LANES), in_map),
                pl.BlockSpec((TR, cps, _LANES), in_map),
            ],
            out_specs=(
                pl.BlockSpec((None, TR, _LANES), out_map),
                pl.BlockSpec((None, TR, _LANES), out_map),
            ),
        ),
        compiler_params=pltpu.CompilerParams(
            dimension_semantics=("parallel", "parallel", "arbitrary"),
            vmem_limit_bytes=vmem_cap // 2,
        ),
    )(x, t)

    # Tiny epilogue in plain JAX: split-axis + cross-lane reduce, weighting, means.
    inter = jnp.sum(inter_l, axis=(0, 2)).reshape(B, C)
    union = jnp.sum(usum_l, axis=(0, 2)).reshape(B, C) + EPSILON
    if weight_score is None:
        dice = 2.0 * inter / union
    else:
        w = jnp.asarray(weight_score, jnp.float32).reshape(1, C)
        dice = 2.0 * inter * w / union
    return jnp.mean(-1.0 * jnp.mean(dice, axis=1))


if __name__ == "__main__":
    key = jax.random.PRNGKey(0)
    B, C, H, W = 2, 4, 16, 16
    k1, k2 = jax.random.split(key)

    # Predictions: soft probabilities per channel (like a softmax output), f32.
    logits = jax.random.normal(k1, (B, C, H, W), dtype=jnp.float32)
    inp = jax.nn.softmax(logits, axis=1)

    # Target: one-hot over channels, kept in bf16 (exact for 0/1).
    labels = jax.random.randint(k2, (B, H, W), 0, C)
    target_one_hot = jax.nn.one_hot(labels, C, axis=1, dtype=jnp.bfloat16)

    # Per-class weights (config['training_config']['weight_score']).
    weight_score = jnp.array([1.0, 0.5, 2.0, 1.5], dtype=jnp.float32)

    # min_pallas_bytes=0 forces the Pallas path at this demo size so the
    # kernel itself is exercised (real workloads use the auto threshold).
    loss = jax.block_until_ready(
        multiclass_dice_loss(inp, target_one_hot, weight_score,
                             min_pallas_bytes=0))

    ref = _reference_loss(inp, target_one_hot, weight_score)
    assert jnp.allclose(loss, ref, rtol=1e-5, atol=1e-6), (loss, ref)

    print("KERNEL_OK")
</pallas_src>

<mosaic_0001>
module attributes {stable_mosaic.version = 11 : i64} {
  func.func @_dice_partials_kernel(%arg0: i32, %arg1: i32, %arg2: i32, %arg3: memref<8x2x128xf32, #tpu.memory_space<vmem>>, %arg4: memref<8x2x128xbf16, #tpu.memory_space<vmem>>, %arg5: memref<1x8x128xf32, #tpu.memory_space<vmem>>, %arg6: memref<1x8x128xf32, #tpu.memory_space<vmem>>) attributes {dimension_semantics = [#tpu.dimension_semantics<parallel>, #tpu.dimension_semantics<parallel>, #tpu.dimension_semantics<arbitrary>], iteration_bounds = array<i64: 1, 1, 1>, scalar_prefetch = 0 : i64, scratch_operands = 0 : i64, tpu.core_type = #tpu.core_type<tc>, window_params = [{transform_indices = @transform_0, window_bounds = array<i64: 8, 2, 128>}, {transform_indices = @transform_1, window_bounds = array<i64: 8, 2, 128>}, {transform_indices = @transform_2, window_bounds = array<i64: 1, 8, 128>}, {transform_indices = @transform_3, window_bounds = array<i64: 1, 8, 128>}]} {
    %c0_i32 = arith.constant 0 : i32
    %0 = arith.cmpi eq, %arg2, %c0_i32 : i32
    %1 = arith.extui %0 : i1 to i32
    %c0_i32_0 = arith.constant 0 : i32
    %2 = arith.cmpi ne, %1, %c0_i32_0 : i32
    scf.if %2 {
      %cst_19 = arith.constant 0.000000e+00 : f32
      %29 = vector.broadcast %cst_19 : f32 to vector<8x128xf32>
      %c0_20 = arith.constant 0 : index
      %c0_21 = arith.constant 0 : index
      %c0_22 = arith.constant 0 : index
      %30 = vector.load %arg5[%c0_20, %c0_21, %c0_22] : memref<1x8x128xf32, #tpu.memory_space<vmem>>, vector<1x8x128xf32>
      %31 = vector.shape_cast %30 : vector<1x8x128xf32> to vector<8x128xf32>
      %32 = vector.shape_cast %29 : vector<8x128xf32> to vector<1x8x128xf32>
      tpu.vector_store %arg5[%c0_20, %c0_21, %c0_22], %32 {strides = array<i32>} : memref<1x8x128xf32, #tpu.memory_space<vmem>>, vector<1x8x128xf32>,
      %cst_23 = arith.constant 0.000000e+00 : f32
      %33 = vector.broadcast %cst_23 : f32 to vector<8x128xf32>
      %c0_24 = arith.constant 0 : index
      %c0_25 = arith.constant 0 : index
      %c0_26 = arith.constant 0 : index
      %34 = vector.load %arg6[%c0_24, %c0_25, %c0_26] : memref<1x8x128xf32, #tpu.memory_space<vmem>>, vector<1x8x128xf32>
      %35 = vector.shape_cast %34 : vector<1x8x128xf32> to vector<8x128xf32>
      %36 = vector.shape_cast %33 : vector<8x128xf32> to vector<1x8x128xf32>
      tpu.vector_store %arg6[%c0_24, %c0_25, %c0_26], %36 {strides = array<i32>} : memref<1x8x128xf32, #tpu.memory_space<vmem>>, vector<1x8x128xf32>,
    } else {
    }
    %cst = arith.constant 0.000000e+00 : f32
    %3 = vector.broadcast %cst : f32 to vector<8x2x128xf32>
    %c0_i32_1 = arith.constant 0 : i32
    %c2_i32 = arith.constant 2 : i32
    %4 = arith.muli %c0_i32_1, %c2_i32 : i32
    %5 = tpu.assume_multiple %4, 2 : i32
    %c0 = arith.constant 0 : index
    %6 = arith.index_cast %5 : i32 to index
    %c0_2 = arith.constant 0 : index
    %7 = vector.load %arg3[%c0, %6, %c0_2] : memref<8x2x128xf32, #tpu.memory_space<vmem>>, vector<8x2x128xf32>
    %c0_3 = arith.constant 0 : index
    %8 = arith.index_cast %5 : i32 to index
    %c0_4 = arith.constant 0 : index
    %9 = vector.load %arg4[%c0_3, %8, %c0_4] : memref<8x2x128xbf16, #tpu.memory_space<vmem>>, vector<8x2x128xbf16>
    %10 = arith.extf %9 : vector<8x2x128xbf16> to vector<8x2x128xf32>
    %11 = arith.mulf %7, %10 : vector<8x2x128xf32>
    %12 = arith.addf %3, %11 : vector<8x2x128xf32>
    %13 = arith.addf %3, %7 : vector<8x2x128xf32>
    %14 = arith.addf %13, %10 : vector<8x2x128xf32>
    %c1_i32 = arith.constant 1 : i32
    %c0_5 = arith.constant 0 : index
    %c0_6 = arith.constant 0 : index
    %c0_7 = arith.constant 0 : index
    %15 = vector.load %arg5[%c0_5, %c0_6, %c0_7] : memref<1x8x128xf32, #tpu.memory_space<vmem>>, vector<1x8x128xf32>
    %16 = vector.shape_cast %15 : vector<1x8x128xf32> to vector<8x128xf32>
    %cst_8 = arith.constant dense<0.000000e+00> : vector<8x128xf32>
    %17 = vector.multi_reduction <add>, %12, %cst_8 [1] : vector<8x2x128xf32> to vector<8x128xf32>
    %18 = arith.addf %16, %17 : vector<8x128xf32>
    %c0_9 = arith.constant 0 : index
    %c0_10 = arith.constant 0 : index
    %c0_11 = arith.constant 0 : index
    %19 = vector.load %arg5[%c0_9, %c0_10, %c0_11] : memref<1x8x128xf32, #tpu.memory_space<vmem>>, vector<1x8x128xf32>
    %20 = vector.shape_cast %19 : vector<1x8x128xf32> to vector<8x128xf32>
    %21 = vector.shape_cast %18 : vector<8x128xf32> to vector<1x8x128xf32>
    tpu.vector_store %arg5[%c0_9, %c0_10, %c0_11], %21 {strides = array<i32>} : memref<1x8x128xf32, #tpu.memory_space<vmem>>, vector<1x8x128xf32>,
    %c0_12 = arith.constant 0 : index
    %c0_13 = arith.constant 0 : index
    %c0_14 = arith.constant 0 : index
    %22 = vector.load %arg6[%c0_12, %c0_13, %c0_14] : memref<1x8x128xf32, #tpu.memory_space<vmem>>, vector<1x8x128xf32>
    %23 = vector.shape_cast %22 : vector<1x8x128xf32> to vector<8x128xf32>
    %cst_15 = arith.constant dense<0.000000e+00> : vector<8x128xf32>
    %24 = vector.multi_reduction <add>, %14, %cst_15 [1] : vector<8x2x128xf32> to vector<8x128xf32>
    %25 = arith.addf %23, %24 : vector<8x128xf32>
    %c0_16 = arith.constant 0 : index
    %c0_17 = arith.constant 0 : index
    %c0_18 = arith.constant 0 : index
    %26 = vector.load %arg6[%c0_16, %c0_17, %c0_18] : memref<1x8x128xf32, #tpu.memory_space<vmem>>, vector<1x8x128xf32>
    %27 = vector.shape_cast %26 : vector<1x8x128xf32> to vector<8x128xf32>
    %28 = vector.shape_cast %25 : vector<8x128xf32> to vector<1x8x128xf32>
    tpu.vector_store %arg6[%c0_16, %c0_17, %c0_18], %28 {strides = array<i32>} : memref<1x8x128xf32, #tpu.memory_space<vmem>>, vector<1x8x128xf32>,
    return
  }
  func.func @transform_0(%arg0: i32, %arg1: i32, %arg2: i32) -> (i32, i32, i32) {
    %c1_i32 = arith.constant 1 : i32
    %0 = arith.muli %arg0, %c1_i32 : i32
    %1 = arith.addi %0, %arg2 : i32
    %c0_i32 = arith.constant 0 : i32
    %2 = arith.minsi %1, %c0_i32 : i32
    %c0_i32_0 = arith.constant 0 : i32
    %c0_i32_1 = arith.constant 0 : i32
    return %arg1, %2, %c0_i32_0 : i32, i32, i32
  }
  func.func @transform_1(%arg0: i32, %arg1: i32, %arg2: i32) -> (i32, i32, i32) {
    %c1_i32 = arith.constant 1 : i32
    %0 = arith.muli %arg0, %c1_i32 : i32
    %1 = arith.addi %0, %arg2 : i32
    %c0_i32 = arith.constant 0 : i32
    %2 = arith.minsi %1, %c0_i32 : i32
    %c0_i32_0 = arith.constant 0 : i32
    %c0_i32_1 = arith.constant 0 : i32
    return %arg1, %2, %c0_i32_0 : i32, i32, i32
  }
  func.func @transform_2(%arg0: i32, %arg1: i32, %arg2: i32) -> (i32, i32, i32) {
    %c0_i32 = arith.constant 0 : i32
    %c0_i32_0 = arith.constant 0 : i32
    return %arg0, %arg1, %c0_i32 : i32, i32, i32
  }
  func.func @transform_3(%arg0: i32, %arg1: i32, %arg2: i32) -> (i32, i32, i32) {
    %c0_i32 = arith.constant 0 : i32
    %c0_i32_0 = arith.constant 0 : i32
    return %arg0, %arg1, %c0_i32 : i32, i32, i32
  }
}

</mosaic_0001>

<bundles_post_ra>
// kernel: tpu_custom_call.1
= control target key start
LH: loop header
LB: loop body
LE: loop exit
PB: predicated region body
PF: predicated region fallthrough
CT: control target
= control target key end

     0   :  { %9 = vsyncpa [#allocation3], 0  ;;  %s593_s0 = inlined_call_operand.hbm [shape: f32[8,2,128], index: 0, kind: input, shape index: {}]   ;;  %s594_s1 = inlined_call_operand.hbm [shape: bf16[8,2,128], index: 1, kind: input, shape index: {}]   ;;  %s595_s2 = inlined_call_operand.hbm [shape: f32[1,8,128], index: 2, kind: output, shape index: {0}]   ;;  %s596_s3 = inlined_call_operand.hbm [shape: f32[1,8,128], index: 3, kind: output, shape index: {1}]  }
   0x1   :  { %10 = vsyncpa [#allocation6], 0 }
   0x2   :  { %11 = vsyncpa [#allocation4], 0 }
   0x3   :  { %12 = vsyncpa [#allocation9], 0  ;;  %s22_s14 = sshll.u32 %s593_s0, 4  ;;  %s432_s15 = smov [#allocation2]   ;;  %s23_s14 = int_to_ptr.hbm [resolvable:$true] %s22_s14 }
   0x4   :  { %s24_s16 = sshll.u32 %s432_s15, 4  ;;  %s39_s19 = sshll.u32 %s594_s1, 4  ;;  %s25_s16 = int_to_ptr.vmem [resolvable:$true] %s24_s16  ;;  %s40_s19 = int_to_ptr.hbm [resolvable:$true] %s39_s19 }
   0x5   :  { %s433_s20 = smov 32   ;;  %s434_s21 = smov 2  }
   0x6   :  { %30 = dma.hbm_to_vmem [thread:$0]  %s23_s14, 256, %s25_s16, [#allocation3], %s433_s20, %s433_s20, %s434_s21  }
   0x7   :  { %s435_s22 = smov [#allocation5]   ;;  %s436_s24 = smov 16  }
   0x8   :  { %s41_s23 = sshll.u32 %s435_s22, 4  ;;  %s437_s25 = smov 1   ;;  %s42_s23 = int_to_ptr.vmem [resolvable:$true] %s41_s23 }
   0x9   :  { %47 = dma.hbm_to_vmem [thread:$0]  %s40_s19, 128, %s42_s23, [#allocation6], %s436_s24, %s436_s24, %s437_s25  }
   0xa   :  { %424 = dma.done.wait [#allocation3], 256  }
   0xb   :  { %425 = vsyncadd [#allocation3], 4294967040 }
   0xc   :  { %426 = dma.done.wait [#allocation6], 128  }
   0xd   :  { %427 = vsyncadd [#allocation6], 4294967168  ;;  %v466_v0 = vld [vmem:[#allocation2] sm:$0x3]  ;;  %vm125_vm0 = vcmask 1041408   ;;  %vm190_vm1 = vcmask 1041409  }
   0xe   :  { %v468_v1 = vld [vmem:[#allocation2 + $0x2] sm:$0x3]  ;;  %v470_v2 = vld [vmem:[#allocation2 + $0x4] sm:$0x3]  ;;  %v472_v3 = vld [vmem:[#allocation2 + $0x6] sm:$0x3] }
   0xf   :  { %v474_v4 = vld [vmem:[#allocation2 + $0x8] sm:$0x3]  ;;  %v476_v5 = vld [vmem:[#allocation2 + $0xa] sm:$0x3]  ;;  %v478_v6 = vld [vmem:[#allocation2 + $0xc] sm:$0x3] }
  0x10   :  { %v480_v7 = vld [vmem:[#allocation5] sm:$0x1]  ;;  %v482_v8 = vld [vmem:[#allocation5 + $0x1] sm:$0x1]  ;;  %v484_v9 = vld [vmem:[#allocation5 + $0x2] sm:$0x1] }
  0x11   :  { %v486_v10 = vld [vmem:[#allocation5 + $0x3] sm:$0x1]  ;;  %v84_v11 = vunpack.c.l.bf16 %v480_v7  ;;  %v489_v12 = vld [vmem:[#allocation5 + $0x4] sm:$0x1]  ;;  %v491_v13 = vld [vmem:[#allocation5 + $0x5] sm:$0x1]  ;;  %v85_v15 = vunpack.c.l.bf16 %v482_v8  ;;  %v86_v16 = vunpack.c.l.bf16 %v484_v9 }
  0x12   :  { %v493_v14 = vld [vmem:[#allocation5 + $0x6] sm:$0x1]  ;;  %v87_v17 = vunpack.c.l.bf16 %v486_v10  ;;  %v498_v18 = vld [vmem:[#allocation2 + $0xe] sm:$0x3]  ;;  %v500_v19 = vld [vmem:[#allocation5 + $0x7] sm:$0x1]  ;;  %v88_v20 = vunpack.c.l.bf16 %v489_v12  ;;  %v89_v21 = vunpack.c.l.bf16 %v491_v13 }
  0x13   :  { %v90_v22 = vunpack.c.l.bf16 %v493_v14  ;;  %v92_v23 = vmul.f32 %v84_v11, %v466_v0  ;;  %v91_v24 = vunpack.c.l.bf16 %v500_v19  ;;  %v93_v25 = vmul.f32 %v85_v15, %v468_v1  ;;  %s438_s0 = smov [#allocation7]   ;;  %s289_s28 = sshll.u32 %s595_s2, 4  ;;  %s290_s28 = int_to_ptr.hbm [resolvable:$true] %s289_s28 }
  0x14   :  { %v94_v26 = vmul.f32 %v86_v16, %v470_v2  ;;  %v95_v27 = vmul.f32 %v87_v17, %v472_v3  ;;  %v96_v28 = vmul.f32 %v88_v20, %v474_v4  ;;  %v97_v29 = vmul.f32 %v89_v21, %v476_v5  ;;  %s569_s1 = sshll.u32 %s438_s0, 4  ;;  %s439_s2 = smov [#allocation8]   ;;  %s288_s1 = int_to_ptr.vmem [resolvable:$true] %s569_s1 }
  0x15   :  { %v98_v30 = vmul.f32 %v90_v22, %v478_v6  ;;  %v126_v31 = vsel %vm125_vm0, %v92_v23, 0.0  ;;  %v99_v32 = vmul.f32 %v91_v24, %v498_v18  ;;  %v133_v34 = vsel %vm125_vm0, %v93_v25, 0.0  ;;  %s298_s29 = sshll.u32 %s439_s2, 4  ;;  %s300_s5 = sshll.u32 %s596_s3, 4  ;;  %s299_s29 = int_to_ptr.vmem [resolvable:$true] %s298_s29  ;;  %s301_s5 = int_to_ptr.hbm [resolvable:$true] %s300_s5 }
  0x16   :  { %v127_v33 = vrot.slane %v126_v31, 4  ;;  %v140_v35 = vsel %vm125_vm0, %v94_v26, 0.0  ;;  %v134_v36 = vrot.slane %v133_v34, 4  ;;  %v147_v38 = vsel %vm125_vm0, %v95_v27, 0.0 }
  0x17   :  { %v141_v37 = vrot.slane %v140_v35, 4  ;;  %v154_v39 = vsel %vm125_vm0, %v96_v28, 0.0  ;;  %v148_v41 = vrot.slane %v147_v38, 4  ;;  %v161_v43 = vsel %vm125_vm0, %v97_v29, 0.0 }
  0x18   :  { %v128_v40 = vadd.f32 %v127_v33, %v126_v31  ;;  %v155_v42 = vrot.slane %v154_v39, 4  ;;  %v135_v44 = vadd.f32 %v134_v36, %v133_v34  ;;  %v162_v46 = vrot.slane %v161_v43, 4 }
  0x19   :  { %v142_v45 = vadd.f32 %v141_v37, %v140_v35  ;;  %v168_v47 = vsel %vm125_vm0, %v98_v30, 0.0  ;;  %vm192_vm2 = vcmask 1042434   ;;  %v149_v49 = vadd.f32 %v148_v41, %v147_v38 }
  0x1a   :  { %v129_v48 = vrot.slane %v128_v40, 2  ;;  %v156_v50 = vadd.f32 %v155_v42, %v154_v39  ;;  %v169_v51 = vrot.slane %v168_v47, 4  ;;  %vm194_vm3 = vcmask 1043459  }
  0x1b   :  { %v136_v52 = vrot.slane %v135_v44, 2  ;;  %v143_v53 = vrot.slane %v142_v45, 2  ;;  %v163_v54 = vadd.f32 %v162_v46, %v161_v43  ;;  %v175_v55 = vsel %vm125_vm0, %v99_v32, 0.0 }
  0x1c   :  { %vm196_vm4 = vcmask 1044484   ;;  %v130_v56 = vadd.f32 %v129_v48, %v128_v40  ;;  %v150_v57 = vrot.slane %v149_v49, 2  ;;  %v157_v58 = vrot.slane %v156_v50, 2 }
  0x1d   :  { %v170_v59 = vadd.f32 %v169_v51, %v168_v47  ;;  %vm198_vm5 = vcmask 1045509   ;;  %v137_v60 = vadd.f32 %v136_v52, %v135_v44  ;;  %v144_v61 = vadd.f32 %v143_v53, %v142_v45 }
  0x1e   :  { %v164_v62 = vrot.slane %v163_v54, 2  ;;  %v176_v63 = vrot.slane %v175_v55, 4  ;;  %vm200_vm6 = vcmask 1046534   ;;  %v131_v23 = vrot.slane %v130_v56, 1 }
  0x1f   :  { %v151_v25 = vadd.f32 %v150_v57, %v149_v49  ;;  %v158_v26 = vadd.f32 %v157_v58, %v156_v50  ;;  %v171_v27 = vrot.slane %v170_v59, 2  ;;  %vm202_vm7 = vcmask 1047559  }
  0x20   :  { %v138_v28 = vrot.slane %v137_v60, 1  ;;  %v145_v29 = vrot.slane %v144_v61, 1  ;;  %v165_v30 = vadd.f32 %v164_v62, %v163_v54  ;;  %v177_v31 = vadd.f32 %v176_v63, %v175_v55 }
  0x21   :  { %v132_v32 = vadd.f32 %v131_v23, %v130_v56  ;;  %v152_v33 = vrot.slane %v151_v25, 1  ;;  %v159_v34 = vrot.slane %v158_v26, 1  ;;  %v172_v35 = vadd.f32 %v171_v27, %v170_v59 }
  0x22   :  { %v139_v36 = vadd.f32 %v138_v28, %v137_v60  ;;  %v146_v37 = vadd.f32 %v145_v29, %v144_v61  ;;  %v166_v38 = vrot.slane %v165_v30, 1  ;;  %v178_v39 = vrot.slane %v177_v31, 2 }
  0x23   :  { %v153_v40 = vadd.f32 %v152_v33, %v151_v25  ;;  %v160_v41 = vadd.f32 %v159_v34, %v158_v26  ;;  %v173_v42 = vrot.slane %v172_v35, 1  ;;  %v116_v43 = vadd.f32 %v84_v11, %v466_v0 }
  0x24   :  { %v167_v44 = vadd.f32 %v166_v38, %v165_v30  ;;  %v179_v45 = vadd.f32 %v178_v39, %v177_v31  ;;  %v191_v46 = vsel %vm190_vm1, %v139_v36, %v132_v32  ;;  %v117_v47 = vadd.f32 %v85_v15, %v468_v1 }
  0x25   :  { %v174_v48 = vadd.f32 %v173_v42, %v172_v35  ;;  %v193_v49 = vsel %vm192_vm2, %v146_v37, %v191_v46  ;;  %v118_v50 = vadd.f32 %v86_v16, %v470_v2  ;;  %v119_v7 = vadd.f32 %v87_v17, %v472_v3 }
  0x26   :  { %v180_v0 = vrot.slane %v179_v45, 1  ;;  %v195_v11 = vsel %vm194_vm3, %v153_v40, %v193_v49  ;;  %v120_v51 = vadd.f32 %v88_v20, %v474_v4  ;;  %v121_v1 = vadd.f32 %v89_v21, %v476_v5 }
  0x27   :  { %v197_v8 = vsel %vm196_vm4, %v160_v41, %v195_v11  ;;  %v122_v2 = vadd.f32 %v90_v22, %v478_v6  ;;  %v123_v3 = vadd.f32 %v91_v24, %v498_v18  ;;  %v208_v9 = vsel %vm125_vm0, %v116_v43, 0.0 }
  0x28   :  { %v181_v10 = vadd.f32 %v180_v0, %v179_v45  ;;  %v199_v12 = vsel %vm198_vm5, %v167_v44, %v197_v8  ;;  %v209_v4 = vrot.slane %v208_v9, 4  ;;  %v215_v15 = vsel %vm125_vm0, %v117_v47, 0.0 }
  0x29   :  { %v201_v5 = vsel %vm200_vm6, %v174_v48, %v199_v12  ;;  %v216_v6 = vrot.slane %v215_v15, 4  ;;  %v222_v13 = vsel %vm125_vm0, %v118_v50, 0.0  ;;  %v229_v14 = vsel %vm125_vm0, %v119_v7, 0.0 }
  0x2a   :  { %v203_v16 = vsel %vm202_vm7, %v181_v10, %v201_v5  ;;  %v210_v17 = vadd.f32 %v209_v4, %v208_v9  ;;  %v223_v18 = vrot.slane %v222_v13, 4  ;;  %v230_v19 = vrot.slane %v229_v14, 4 }
  0x2b   :  { %v217_v20 = vadd.f32 %v216_v6, %v215_v15  ;;  %v236_v21 = vsel %vm125_vm0, %v120_v51, 0.0  ;;  %v243_v22 = vsel %vm125_vm0, %v121_v1, 0.0  ;;  %206 = vst [vmem:[#allocation7] sm:$0xff] %v203_v16  ;;  %v250_v57 = vsel %vm125_vm0, %v122_v2, 0.0 }
  0x2c   :  { %v211_v24 = vrot.slane %v210_v17, 2  ;;  %v224_v52 = vadd.f32 %v223_v18, %v222_v13  ;;  %v231_v53 = vadd.f32 %v230_v19, %v229_v14  ;;  %v237_v54 = vrot.slane %v236_v21, 4  ;;  %292 = dma.vmem_to_hbm [thread:$0]  %s288_s1, 128, %s290_s28, [#allocation4]  }
  0x2d   :  { %v218_v55 = vrot.slane %v217_v20, 2  ;;  %v244_v56 = vrot.slane %v243_v22, 4  ;;  %v257_v58 = vsel %vm125_vm0, %v123_v3, 0.0  ;;  %v251_v25 = vrot.slane %v250_v57, 4 }
  0x2e   :  { %v212_v59 = vadd.f32 %v211_v24, %v210_v17  ;;  %v225_v60 = vrot.slane %v224_v52, 2  ;;  %v232_v61 = vrot.slane %v231_v53, 2  ;;  %v238_v62 = vadd.f32 %v237_v54, %v236_v21 }
  0x2f   :  { %v219_v63 = vadd.f32 %v218_v55, %v217_v20  ;;  %v245_v23 = vadd.f32 %v244_v56, %v243_v22  ;;  %v258_v26 = vrot.slane %v257_v58, 4  ;;  %v252_v33 = vadd.f32 %v251_v25, %v250_v57 }
  0x30   :  { %v213_v27 = vrot.slane %v212_v59, 1  ;;  %v226_v28 = vadd.f32 %v225_v60, %v224_v52  ;;  %v233_v29 = vadd.f32 %v232_v61, %v231_v53  ;;  %v239_v30 = vrot.slane %v238_v62, 2 }
  0x31   :  { %v220_v31 = vrot.slane %v219_v63, 1  ;;  %v246_v32 = vrot.slane %v245_v23, 2  ;;  %v259_v34 = vadd.f32 %v258_v26, %v257_v58  ;;  %v253_v41 = vrot.slane %v252_v33, 2 }
  0x32   :  { %v214_v35 = vadd.f32 %v213_v27, %v212_v59  ;;  %v227_v36 = vrot.slane %v226_v28, 1  ;;  %v234_v37 = vrot.slane %v233_v29, 1  ;;  %v240_v38 = vadd.f32 %v239_v30, %v238_v62 }
  0x33   :  { %v221_v39 = vadd.f32 %v220_v31, %v219_v63  ;;  %v247_v40 = vadd.f32 %v246_v32, %v245_v23  ;;  %v260_v42 = vrot.slane %v259_v34, 2  ;;  %v254_v47 = vadd.f32 %v253_v41, %v252_v33 }
  0x34   :  { %v228_v43 = vadd.f32 %v227_v36, %v226_v28  ;;  %v235_v44 = vadd.f32 %v234_v37, %v233_v29  ;;  %v241_v45 = vrot.slane %v240_v38, 1 }
  0x35   :  { %v248_v46 = vrot.slane %v247_v40, 1  ;;  %v261_v48 = vadd.f32 %v260_v42, %v259_v34  ;;  %v272_v49 = vsel %vm190_vm1, %v221_v39, %v214_v35  ;;  %v255_v11 = vrot.slane %v254_v47, 1 }
  0x36   :  { %v242_v50 = vadd.f32 %v241_v45, %v240_v38  ;;  %v273_v7 = vsel %vm192_vm2, %v228_v43, %v272_v49 }
  0x37   :  { %v249_v0 = vadd.f32 %v248_v46, %v247_v40  ;;  %v262_v51 = vrot.slane %v261_v48, 1  ;;  %v274_v1 = vsel %vm194_vm3, %v235_v44, %v273_v7  ;;  %v256_v2 = vadd.f32 %v255_v11, %v254_v47 }
  0x38   :  { %v275_v8 = vsel %vm196_vm4, %v242_v50, %v274_v1 }
  0x39   :  { %v263_v3 = vadd.f32 %v262_v51, %v261_v48  ;;  %v276_v9 = vsel %vm198_vm5, %v249_v0, %v275_v8 }
  0x3a   :  { %v277_v10 = vsel %vm200_vm6, %v256_v2, %v276_v9 }
  0x3b   :  { %v278_v12 = vsel %vm202_vm7, %v263_v3, %v277_v10 }
  0x3c   :  { %281 = vst [vmem:[#allocation8] sm:$0xff] %v278_v12 }
  0x3d   :  { %303 = dma.vmem_to_hbm [thread:$0]  %s299_s29, 128, %s301_s5, [#allocation9]  }
  0x3e   :  { %428 = dma.done.wait [#allocation4], 128  }
  0x3f   :  { %429 = vsyncadd [#allocation4], 4294967168 }
  0x40   :  { %430 = dma.done.wait [#allocation9], 128  }
  0x41   :  { %431 = vsyncadd [#allocation9], 4294967168 }
  0x42   :  { %312 = vsyncpa [#allocation3], 1 }
  0x43   :  { %313 = vsyncpa [#allocation6], 1 }
  0x44   :  { %314 = vsyncpa [#allocation4], 1 }
  0x45   :  { %315 = vsyncpa [#allocation9], 1 }

</bundles_post_ra>
